<compile_context>
chip_gen: v5e
topology: v5e:2x2
jax: 0.10.0
libtpu: 0.0.40
codegen_flags: <defaults>
</compile_context>

<pallas_src>
import functools

import jax
import jax.numpy as jnp
from jax.experimental import pallas as pl
from jax.experimental.pallas import tpu as pltpu

LEAKY_SLOPE = 0.01   # PyTorch nn.LeakyReLU default negative_slope
PAD = 128            # lane width; all feature dims padded to this
ONE_LANE = PAD - 1   # lane carrying a constant 1.0 (bias folding)


def _round_up(x, m):
    return ((x + m - 1) // m) * m


def _mlp_kernel(n_layers, x_ref, w_ref, o_ref):
    """x_ref: (TB, PAD); w_ref: (n_layers, PAD, PAD) grid-resident; o_ref: (TB, PAD).

    h = x  (lane ONE_LANE == 1.0)
    for i in range(n_layers):
        h = h @ W_i                      # bias folded into row ONE_LANE of W_i
        if i < n_layers - 1:
            h = leaky_relu(h)
    """
    h = x_ref[...]
    for i in range(n_layers):            # n_layers is small and static -> fully unrolled
        h = jnp.dot(h, w_ref[i], preferred_element_type=jnp.float32)
        if i < n_layers - 1:
            h = jnp.where(h > 0, h, LEAKY_SLOPE * h)
    o_ref[...] = h.astype(o_ref.dtype)


def pack_params(params, pad=PAD):
    """Pack [(W(in,out), b(1,out)), ...] into one (n_layers, pad, pad) f32 tensor.

    Layer i's weight sits in [:in, :out]; its bias sits in row ONE_LANE (the
    ones-carrier row); the carrier is propagated (W[ONE_LANE, ONE_LANE] = 1) on all
    but the last layer.
    """
    n = len(params)
    ws = []
    for i, (w, b) in enumerate(params):
        fi, fo = w.shape
        assert fi < pad and fo < pad, "feature dims must be < 128 for bias folding"
        b = jnp.reshape(b, (-1,))
        wp = jnp.zeros((pad, pad), jnp.float32)
        wp = wp.at[:fi, :fo].set(w.astype(jnp.float32))
        wp = wp.at[ONE_LANE, :fo].set(b.astype(jnp.float32))   # folded bias
        if i < n - 1:
            wp = wp.at[ONE_LANE, ONE_LANE].set(1.0)            # propagate ones carrier
        ws.append(wp)
    return jnp.stack(ws, axis=0)


def pad_input(x, pad=PAD):
    """Zero-pad features to `pad` lanes and set the ones-carrier lane to 1.0."""
    B, F = x.shape
    xp = jnp.zeros((B, pad), jnp.float32)
    xp = xp.at[:, :F].set(x.astype(jnp.float32))
    xp = xp.at[:, ONE_LANE].set(1.0)
    return xp


def dqn_forward(x, params, *, block_batch=256):
    """x: (B, input_layer_size) float32. params: list of (W(in,out), b(1,out))."""
    n_layers = len(params)
    out_dim = params[-1][0].shape[1]
    B = x.shape[0]

    w_packed = pack_params(params)          # (n_layers, 128, 128), single resident DMA
    xp = pad_input(x)                       # (B, 128), lane-dense

    # Batch tiling: TB <= block_batch, multiple of 8 (sublane tiling).
    TB = min(block_batch, _round_up(B, 8))
    Bp = _round_up(B, TB)
    if Bp != B:
        xp = jnp.pad(xp, ((0, Bp - B), (0, 0)))   # padded rows produce values we slice off
    grid = (Bp // TB,)

    flops = 2 * Bp * PAD * PAD * n_layers
    bytes_accessed = (Bp * PAD * 4) * 2 + n_layers * PAD * PAD * 4

    kernel = functools.partial(_mlp_kernel, n_layers)
    out = pl.pallas_call(
        kernel,
        out_shape=jax.ShapeDtypeStruct((Bp, PAD), jnp.float32),
        grid=grid,
        in_specs=[
            pl.BlockSpec((TB, PAD), lambda i: (i, 0)),                  # streamed activations
            pl.BlockSpec((n_layers, PAD, PAD), lambda i: (0, 0, 0)),    # resident packed weights
        ],
        out_specs=pl.BlockSpec((TB, PAD), lambda i: (i, 0)),            # lane-dense output
        compiler_params=pltpu.CompilerParams(
            dimension_semantics=("parallel",),         # v7x: shard batch grid over both TCs
            vmem_limit_bytes=32 * 1024 * 1024,         # safe inside v7x's 64 MiB physical VMEM
        ),
        cost_estimate=pl.CostEstimate(
            flops=flops, transcendentals=0, bytes_accessed=bytes_accessed),
    )(xp, w_packed)

    return out[:B, :out_dim]


def init_dqn_params(key, input_layer_size, hidden_layers):
    """Deterministic init mimicking nn.Linear default (uniform +-1/sqrt(fan_in)).

    Weights stored as (in, out); biases as (1, out).
    """
    params = []
    dims = [input_layer_size] + list(hidden_layers)
    for i in range(len(hidden_layers)):
        fan_in, fan_out = dims[i], dims[i + 1]
        key, kw, kb = jax.random.split(key, 3)
        bound = 1.0 / jnp.sqrt(jnp.float32(fan_in))
        w = jax.random.uniform(kw, (fan_in, fan_out), jnp.float32, -bound, bound)
        b = jax.random.uniform(kb, (1, fan_out), jnp.float32, -bound, bound)
        params.append((w, b))
    return params


def dqn_reference(x, params):
    """Pure-JAX reference for correctness checking."""
    h = x
    n = len(params)
    for i, (w, b) in enumerate(params):
        h = h @ w + b
        if i < n - 1:
            h = jnp.where(h > 0, h, LEAKY_SLOPE * h)
    return h


if __name__ == "__main__":
    key = jax.random.PRNGKey(0)

    # DQN(input_layer_size=16, hidden_layers=[32, 32, 4])
    input_layer_size = 16
    hidden_layers = [32, 32, 4]

    key, kx = jax.random.split(key)
    params = init_dqn_params(key, input_layer_size, hidden_layers)

    # Small batch (single grid step).
    x_small = jax.random.normal(kx, (8, input_layer_size), jnp.float32)
    out_small = jax.block_until_ready(dqn_forward(x_small, params))
    ref_small = dqn_reference(x_small, params)
    assert out_small.shape == (8, hidden_layers[-1])
    assert jnp.allclose(out_small, ref_small, atol=1e-4, rtol=1e-4), "small-batch mismatch"

    # Larger batch (exercises the pipelined batch grid + edge padding).
    key, kx2 = jax.random.split(key)
    x_large = jax.random.normal(kx2, (1000, input_layer_size), jnp.float32)
    out_large = jax.block_until_ready(dqn_forward(x_large, params))
    ref_large = dqn_reference(x_large, params)
    assert out_large.shape == (1000, hidden_layers[-1])
    assert jnp.allclose(out_large, ref_large, atol=1e-4, rtol=1e-4), "large-batch mismatch"

    print("KERNEL_OK")
</pallas_src>

<mosaic_0001>
module attributes {stable_mosaic.version = 11 : i64} {
  func.func @_mlp_kernel(%arg0: i32, %arg1: memref<8x128xf32, #tpu.memory_space<vmem>>, %arg2: memref<3x128x128xf32, #tpu.memory_space<vmem>>, %arg3: memref<8x128xf32, #tpu.memory_space<vmem>>) attributes {dimension_semantics = [#tpu.dimension_semantics<parallel>], iteration_bounds = array<i64: 1>, scalar_prefetch = 0 : i64, scratch_operands = 0 : i64, tpu.core_type = #tpu.core_type<tc>, window_params = [{transform_indices = @transform_0, window_bounds = array<i64: 8, 128>}, {pipeline_mode = #tpu.pipeline_mode<synchronous>, transform_indices = @transform_1, window_bounds = array<i64: 3, 128, 128>}, {transform_indices = @transform_2, window_bounds = array<i64: 8, 128>}]} {
    %c0 = arith.constant 0 : index
    %c0_0 = arith.constant 0 : index
    %0 = vector.load %arg1[%c0, %c0_0] : memref<8x128xf32, #tpu.memory_space<vmem>>, vector<8x128xf32>
    %c0_1 = arith.constant 0 : index
    %c0_2 = arith.constant 0 : index
    %c0_3 = arith.constant 0 : index
    %1 = vector.load %arg2[%c0_1, %c0_2, %c0_3] : memref<3x128x128xf32, #tpu.memory_space<vmem>>, vector<1x128x128xf32>
    %2 = vector.shape_cast %1 : vector<1x128x128xf32> to vector<128x128xf32>
    %cst = arith.constant dense<0.000000e+00> : vector<8x128xf32>
    %3 = tpu.matmul %0, %2, %cst {dimension_numbers = #tpu.dot_dimension_numbers<[1], [0], [0], [1], [0, 0, 1, 1], [], []>} : vector<8x128xf32>, vector<128x128xf32>, vector<8x128xf32> -> vector<8x128xf32>
    %cst_4 = arith.constant 0.000000e+00 : f32
    %4 = vector.broadcast %cst_4 : f32 to vector<8x128xf32>
    %5 = arith.cmpf ogt, %3, %4 : vector<8x128xf32>
    %cst_5 = arith.constant 0.00999999977 : f32
    %6 = vector.broadcast %cst_5 : f32 to vector<8x128xf32>
    %7 = arith.mulf %6, %3 : vector<8x128xf32>
    %8 = arith.select %5, %3, %7 : vector<8x128xi1>, vector<8x128xf32>
    %c1 = arith.constant 1 : index
    %c0_6 = arith.constant 0 : index
    %c0_7 = arith.constant 0 : index
    %9 = vector.load %arg2[%c1, %c0_6, %c0_7] : memref<3x128x128xf32, #tpu.memory_space<vmem>>, vector<1x128x128xf32>
    %10 = vector.shape_cast %9 : vector<1x128x128xf32> to vector<128x128xf32>
    %cst_8 = arith.constant dense<0.000000e+00> : vector<8x128xf32>
    %11 = tpu.matmul %8, %10, %cst_8 {dimension_numbers = #tpu.dot_dimension_numbers<[1], [0], [0], [1], [0, 0, 1, 1], [], []>} : vector<8x128xf32>, vector<128x128xf32>, vector<8x128xf32> -> vector<8x128xf32>
    %cst_9 = arith.constant 0.000000e+00 : f32
    %12 = vector.broadcast %cst_9 : f32 to vector<8x128xf32>
    %13 = arith.cmpf ogt, %11, %12 : vector<8x128xf32>
    %cst_10 = arith.constant 0.00999999977 : f32
    %14 = vector.broadcast %cst_10 : f32 to vector<8x128xf32>
    %15 = arith.mulf %14, %11 : vector<8x128xf32>
    %16 = arith.select %13, %11, %15 : vector<8x128xi1>, vector<8x128xf32>
    %c2 = arith.constant 2 : index
    %c0_11 = arith.constant 0 : index
    %c0_12 = arith.constant 0 : index
    %17 = vector.load %arg2[%c2, %c0_11, %c0_12] : memref<3x128x128xf32, #tpu.memory_space<vmem>>, vector<1x128x128xf32>
    %18 = vector.shape_cast %17 : vector<1x128x128xf32> to vector<128x128xf32>
    %cst_13 = arith.constant dense<0.000000e+00> : vector<8x128xf32>
    %19 = tpu.matmul %16, %18, %cst_13 {dimension_numbers = #tpu.dot_dimension_numbers<[1], [0], [0], [1], [0, 0, 1, 1], [], []>} : vector<8x128xf32>, vector<128x128xf32>, vector<8x128xf32> -> vector<8x128xf32>
    %c0_14 = arith.constant 0 : index
    %c0_15 = arith.constant 0 : index
    %20 = vector.load %arg3[%c0_14, %c0_15] : memref<8x128xf32, #tpu.memory_space<vmem>>, vector<8x128xf32>
    tpu.vector_store %arg3[%c0_14, %c0_15], %19 {strides = array<i32>} : memref<8x128xf32, #tpu.memory_space<vmem>>, vector<8x128xf32>,
    return
  }
  func.func @transform_0(%arg0: i32) -> (i32, i32) {
    %c0_i32 = arith.constant 0 : i32
    %c0_i32_0 = arith.constant 0 : i32
    return %arg0, %c0_i32 : i32, i32
  }
  func.func @transform_1(%arg0: i32) -> (i32, i32, i32) {
    %c0_i32 = arith.constant 0 : i32
    %c0_i32_0 = arith.constant 0 : i32
    %c0_i32_1 = arith.constant 0 : i32
    %c0_i32_2 = arith.constant 0 : i32
    return %c0_i32, %c0_i32_0, %c0_i32_1 : i32, i32, i32
  }
  func.func @transform_2(%arg0: i32) -> (i32, i32) {
    %c0_i32 = arith.constant 0 : i32
    %c0_i32_0 = arith.constant 0 : i32
    return %arg0, %c0_i32 : i32, i32
  }
}

</mosaic_0001>

<bundles_post_ra>
// kernel: tpu_custom_call.1
= control target key start
LH: loop header
LB: loop body
LE: loop exit
PB: predicated region body
PF: predicated region fallthrough
CT: control target
= control target key end

     0   :  { %7 = vsyncpa [#allocation3], 0  ;;  %s290_s0 = inlined_call_operand.hbm [shape: f32[8,128], index: 0, kind: input, shape index: {}]   ;;  %s291_s1 = inlined_call_operand.hbm [shape: f32[3,128,128], index: 1, kind: input, shape index: {}]   ;;  %s292_s2 = inlined_call_operand.hbm [shape: f32[8,128], index: 2, kind: output, shape index: {}]  }
   0x1   :  { %8 = vsyncpa [#allocation6], 0 }
   0x2   :  { %9 = vsyncpa [#allocation4], 0  ;;  %s15_s11 = sshll.u32 %s290_s0, 4  ;;  %s261_s12 = smov [#allocation2]   ;;  %s16_s11 = int_to_ptr.hbm [resolvable:$true] %s15_s11 }
   0x3   :  { %s17_s13 = sshll.u32 %s261_s12, 4  ;;  %s25_s16 = sshll.u32 %s291_s1, 4  ;;  %s18_s13 = int_to_ptr.vmem [resolvable:$true] %s17_s13  ;;  %s26_s16 = int_to_ptr.hbm [resolvable:$true] %s25_s16 }
   0x4   :  { %20 = dma.hbm_to_vmem [thread:$0]  %s16_s11, 128, %s18_s13, [#allocation3]  }
   0x5   :  { %s262_s17 = smov [#allocation5]   ;;  %s263_s19 = smov 128  }
   0x6   :  { %s27_s18 = sshll.u32 %s262_s17, 4  ;;  %s264_s20 = smov 8   ;;  %s28_s18 = int_to_ptr.vmem [resolvable:$true] %s27_s18 }
   0x7   :  { %33 = dma.hbm_to_vmem [thread:$0]  %s26_s16, 6144, %s28_s18, [#allocation6], %s263_s19, %s263_s19, %s264_s20  }
   0x8   :  { %255 = dma.done.wait [#allocation3], 128  }
   0x9   :  { %256 = vsyncadd [#allocation3], 4294967168 }
   0xa   :  { %257 = dma.done.wait [#allocation6], 6144  }
   0xb   :  { %258 = vsyncadd [#allocation6], 4294961152  ;;  %v58_v0 = vld [vmem:[#allocation5 + $0x78] sm:$0xff]  ;;  %v57_v1 = vld [vmem:[#allocation5 + $0x70] sm:$0xff]  ;;  %s265_s0 = smov [#allocation7]   ;;  %s167_s23 = sshll.u32 %s292_s2, 4  ;;  %s168_s23 = int_to_ptr.hbm [resolvable:$true] %s167_s23 }
   0xc   :  { %59 = vmatpush.msra.mxu0 %v58_v0  ;;  %v56_v2 = vld [vmem:[#allocation5 + $0x68] sm:$0xff]  ;;  %v55_v3 = vld [vmem:[#allocation5 + $0x60] sm:$0xff]  ;;  %v98_v4 = vld [vmem:[#allocation5 + $0xf8] sm:$0xff]  ;;  %s165_s1 = sshll.u32 %s265_s0, 4  ;;  %s166_s1 = int_to_ptr.vmem [resolvable:$true] %s165_s1 }
   0xd   :  { %v54_v5 = vld [vmem:[#allocation5 + $0x58] sm:$0xff]  ;;  %99 = vmatpush.msra.mxu1 %v98_v4  ;;  %v97_v6 = vld [vmem:[#allocation5 + $0xf0] sm:$0xff]  ;;  %v96_v7 = vld [vmem:[#allocation5 + $0xe8] sm:$0xff] }
   0xe   :  { %60 = vmatpush.msra.mxu0 %v57_v1  ;;  %v53_v8 = vld [vmem:[#allocation5 + $0x50] sm:$0xff]  ;;  %v95_v9 = vld [vmem:[#allocation5 + $0xe0] sm:$0xff]  ;;  %v52_v10 = vld [vmem:[#allocation5 + $0x48] sm:$0xff] }
   0xf   :  { %100 = vmatpush.msra.mxu1 %v97_v6  ;;  %v94_v11 = vld [vmem:[#allocation5 + $0xd8] sm:$0xff]  ;;  %v51_v12 = vld [vmem:[#allocation5 + $0x40] sm:$0xff]  ;;  %v93_v13 = vld [vmem:[#allocation5 + $0xd0] sm:$0xff] }
  0x10   :  { %61 = vmatpush.msra.mxu0 %v56_v2  ;;  %v50_v14 = vld [vmem:[#allocation5 + $0x38] sm:$0xff]  ;;  %v92_v15 = vld [vmem:[#allocation5 + $0xc8] sm:$0xff]  ;;  %v49_v16 = vld [vmem:[#allocation5 + $0x30] sm:$0xff] }
  0x11   :  { %101 = vmatpush.msra.mxu1 %v96_v7  ;;  %v91_v17 = vld [vmem:[#allocation5 + $0xc0] sm:$0xff]  ;;  %v48_v18 = vld [vmem:[#allocation5 + $0x28] sm:$0xff]  ;;  %v90_v19 = vld [vmem:[#allocation5 + $0xb8] sm:$0xff] }
  0x12   :  { %62 = vmatpush.msra.mxu0 %v55_v3  ;;  %v47_v20 = vld [vmem:[#allocation5 + $0x20] sm:$0xff]  ;;  %v89_v21 = vld [vmem:[#allocation5 + $0xb0] sm:$0xff]  ;;  %v46_v22 = vld [vmem:[#allocation5 + $0x18] sm:$0xff] }
  0x13   :  { %102 = vmatpush.msra.mxu1 %v95_v9  ;;  %v88_v23 = vld [vmem:[#allocation5 + $0xa8] sm:$0xff]  ;;  %v45_v24 = vld [vmem:[#allocation5 + $0x10] sm:$0xff]  ;;  %v87_v25 = vld [vmem:[#allocation5 + $0xa0] sm:$0xff] }
  0x14   :  { %63 = vmatpush.msra.mxu0 %v54_v5  ;;  %v44_v26 = vld [vmem:[#allocation5 + $0x8] sm:$0xff]  ;;  %v86_v27 = vld [vmem:[#allocation5 + $0x98] sm:$0xff]  ;;  %v43_v28 = vld [vmem:[#allocation5] sm:$0xff] }
  0x15   :  { %103 = vmatpush.msra.mxu1 %v94_v11  ;;  %v42_v29 = vld [vmem:[#allocation2] sm:$0xff]  ;;  %v85_v30 = vld [vmem:[#allocation5 + $0x90] sm:$0xff]  ;;  %v84_v31 = vld [vmem:[#allocation5 + $0x88] sm:$0xff] }
  0x16   :  { %64 = vmatpush.msra.mxu0 %v53_v8  ;;  %v83_v32 = vld [vmem:[#allocation5 + $0x80] sm:$0xff]  ;;  %v138_v33 = vld [vmem:[#allocation5 + $0x178] sm:$0xff]  ;;  %v137_v34 = vld [vmem:[#allocation5 + $0x170] sm:$0xff] }
  0x17   :  { %104 = vmatpush.msra.mxu1 %v93_v13  ;;  %139 = vmatpush.msra.mxu2 %v138_v33  ;;  %v136_v35 = vld [vmem:[#allocation5 + $0x168] sm:$0xff]  ;;  %v135_v36 = vld [vmem:[#allocation5 + $0x160] sm:$0xff]  ;;  %v134_v37 = vld [vmem:[#allocation5 + $0x158] sm:$0xff] }
  0x18   :  { %65 = vmatpush.msra.mxu0 %v52_v10  ;;  %v133_v38 = vld [vmem:[#allocation5 + $0x150] sm:$0xff]  ;;  %v132_v39 = vld [vmem:[#allocation5 + $0x148] sm:$0xff]  ;;  %v131_v40 = vld [vmem:[#allocation5 + $0x140] sm:$0xff] }
  0x19   :  { %105 = vmatpush.msra.mxu1 %v92_v15  ;;  %140 = vmatpush.msra.mxu2 %v137_v34  ;;  %v130_v41 = vld [vmem:[#allocation5 + $0x138] sm:$0xff]  ;;  %v129_v42 = vld [vmem:[#allocation5 + $0x130] sm:$0xff]  ;;  %v128_v43 = vld [vmem:[#allocation5 + $0x128] sm:$0xff] }
  0x1a   :  { %66 = vmatpush.msra.mxu0 %v51_v12  ;;  %v127_v44 = vld [vmem:[#allocation5 + $0x120] sm:$0xff]  ;;  %v126_v45 = vld [vmem:[#allocation5 + $0x118] sm:$0xff]  ;;  %v125_v46 = vld [vmem:[#allocation5 + $0x110] sm:$0xff] }
  0x1b   :  { %106 = vmatpush.msra.mxu1 %v91_v17  ;;  %141 = vmatpush.msra.mxu2 %v136_v35  ;;  %v124_v50 = vld [vmem:[#allocation5 + $0x108] sm:$0xff]  ;;  %v123_v51 = vld [vmem:[#allocation5 + $0x100] sm:$0xff] }
  0x1c   :  { %67 = vmatpush.msra.mxu0 %v50_v14 }
  0x1d   :  { %107 = vmatpush.msra.mxu1 %v90_v19  ;;  %142 = vmatpush.msra.mxu2 %v135_v36 }
  0x1e   :  { %68 = vmatpush.msra.mxu0 %v49_v16 }
  0x1f   :  { %108 = vmatpush.msra.mxu1 %v89_v21  ;;  %143 = vmatpush.msra.mxu2 %v134_v37 }
  0x20   :  { %69 = vmatpush.msra.mxu0 %v48_v18 }
  0x21   :  { %109 = vmatpush.msra.mxu1 %v88_v23  ;;  %144 = vmatpush.msra.mxu2 %v133_v38 }
  0x22   :  { %70 = vmatpush.msra.mxu0 %v47_v20 }
  0x23   :  { %110 = vmatpush.msra.mxu1 %v87_v25  ;;  %145 = vmatpush.msra.mxu2 %v132_v39 }
  0x24   :  { %71 = vmatpush.msra.mxu0 %v46_v22 }
  0x25   :  { %111 = vmatpush.msra.mxu1 %v86_v27  ;;  %146 = vmatpush.msra.mxu2 %v131_v40 }
  0x26   :  { %72 = vmatpush.msra.mxu0 %v45_v24 }
  0x27   :  { %112 = vmatpush.msra.mxu1 %v85_v30  ;;  %147 = vmatpush.msra.mxu2 %v130_v41 }
  0x28   :  { %73 = vmatpush.msra.mxu0 %v44_v26 }
  0x29   :  { %113 = vmatpush.msra.mxu1 %v84_v31  ;;  %148 = vmatpush.msra.mxu2 %v129_v42 }
  0x2a   :  { %74 = vmatpush.msra.mxu0 %v43_v28 }
  0x2b   :  { %75 = vmatmul.f32.vlgmr.msra.gmra.mxu0 %v42_v29  ;;  %114 = vmatpush.msra.mxu1 %v83_v32 }
  0x2c   :  { %149 = vmatpush.msra.mxu2 %v128_v43 }
  0x2e   :  { %150 = vmatpush.msra.mxu2 %v127_v44 }
  0x30   :  { %151 = vmatpush.msra.mxu2 %v126_v45 }
  0x32   :  { %152 = vmatpush.msra.mxu2 %v125_v46 }
  0x34   :  { %153 = vmatpush.msra.mxu2 %v124_v50 }
  0x36   :  { %154 = vmatpush.msra.mxu2 %v123_v51 }
  0xa8   :  { %v76_v47 = vpop.f32.mrf.mxu0 }
  0xa9   :  { %vm79_vm0 = vcmp.gt.f32.partialorder %v76_v47, 0.0  ;;  %v80_v48 = vmul.f32 0.01, %v76_v47 }
  0xab   :  { %v81_v49 = vsel %vm79_vm0, %v76_v47, %v80_v48 }
  0xac   :  { %115 = vmatmul.f32.vlgmr.msra.gmra.mxu1 %v81_v49 }
 0x129   :  { %v116_v52 = vpop.f32.mrf.mxu1 }
 0x12a   :  { %vm119_vm1 = vcmp.gt.f32.partialorder %v116_v52, 0.0  ;;  %v120_v53 = vmul.f32 0.01, %v116_v52 }
 0x12c   :  { %v121_v54 = vsel %vm119_vm1, %v116_v52, %v120_v53 }
 0x12d   :  { %155 = vmatmul.f32.vlgmr.msra.gmra.mxu2 %v121_v54 }
 0x1b0   :  { %v156_v55 = vpop.f32.mrf.mxu2 }
 0x1b1   :  { %159 = vst [vmem:[#allocation7] sm:$0xff] %v156_v55 }
 0x1b2   :  { %170 = dma.vmem_to_hbm [thread:$0]  %s166_s1, 128, %s168_s23, [#allocation4]  }
 0x1b3   :  { %259 = dma.done.wait [#allocation4], 128  }
 0x1b4   :  { %260 = vsyncadd [#allocation4], 4294967168 }
 0x1b5   :  { %175 = vsyncpa [#allocation3], 1 }
 0x1b6   :  { %176 = vsyncpa [#allocation6], 1 }
 0x1b7   :  { %177 = vsyncpa [#allocation4], 1 }

</bundles_post_ra>
